<compile_context>
chip_gen: v7x
topology: tpu7x:2x2x1
jax: 0.10.0
libtpu: 0.0.40
codegen_flags: <defaults>
</compile_context>

<pallas_src>
import functools
from typing import NamedTuple

import jax
import jax.numpy as jnp
import numpy as np
from jax.experimental import pallas as pl
from jax.experimental.pallas import tpu as pltpu


def _round_up(v: int, m: int) -> int:
    return (v + m - 1) // m * m


class ACDCConstants(NamedTuple):
    Fr: jax.Array        # (K_eff, H+1) forward rDFT basis, real part
    Fi: jax.Array        # (K_eff, H+1) forward rDFT basis, imag part (-sin)
    Gc_p: jax.Array      # (H+1, N_pad) inverse-DFT cos basis, perm + 1/norm folded, lane-padded
    Gs_p: jax.Array      # (H+1, N_pad) inverse-DFT sin basis, perm + 1/norm folded, lane-padded
    perm: jax.Array      # (N,) int32
    inv_norm: jax.Array  # () f32


def make_acdc_constants(in_f: int, out_f: int, perm) -> ACDCConstants:
    """Host-side, built once at layer init (hoisted out of the forward)."""
    N = out_f
    H1 = N // 2 + 1
    K_eff = min(in_f, N)                # rfft(n=N) truncates input beyond N samples
    norm = float(np.sqrt(max(in_f, out_f)))
    N_pad = _round_up(N, 128)           # lane-dense output -> unmasked vst stores

    n_idx = np.arange(K_eff)
    k_idx = np.arange(H1)
    m_idx = np.arange(N)

    theta_f = 2.0 * np.pi * np.outer(n_idx, k_idx) / N      # (K_eff, H1)
    Fr = np.cos(theta_f).astype(np.float32)
    Fi = (-np.sin(theta_f)).astype(np.float32)

    theta_b = 2.0 * np.pi * np.outer(k_idx, m_idx) / N      # (H1, N)
    Gc = (np.cos(theta_b) / N).astype(np.float32)
    Gs = (np.sin(theta_b) / N).astype(np.float32)

    perm = np.asarray(perm)
    # Fold output permutation and 1/sqrt(max(in_f,out_f)) into the inverse-DFT columns;
    # zero-pad to N_pad lanes (padded lanes of W and bias are exactly zero).
    Gc_p = np.zeros((H1, N_pad), np.float32)
    Gs_p = np.zeros((H1, N_pad), np.float32)
    Gc_p[:, :N] = Gc[:, perm] / norm
    Gs_p[:, :N] = Gs[:, perm] / norm

    return ACDCConstants(
        Fr=jnp.asarray(Fr), Fi=jnp.asarray(Fi),
        Gc_p=jnp.asarray(Gc_p), Gs_p=jnp.asarray(Gs_p),
        perm=jnp.asarray(perm, dtype=jnp.int32),
        inv_norm=jnp.asarray(1.0 / norm, dtype=jnp.float32),
    )


def _fold_weight(A_eff, D, consts: ACDCConstants, weight_dtype):
    # NB: bf16 W quantization error grows ~sqrt(K_eff); pass weight_dtype=float32 for
    # very large layers if tighter accuracy is needed.
    M = (consts.Fr * D) @ consts.Gc_p - (consts.Fi * D) @ consts.Gs_p   # (K_eff, N_pad)
    return (A_eff.reshape(-1)[:, None] * M).astype(weight_dtype)


def _fold_bias(bias, consts: ACDCConstants):
    N = consts.perm.shape[0]
    N_pad = consts.Gc_p.shape[1]
    return jnp.pad(bias[:, consts.perm] * consts.inv_norm,
                   ((0, 0), (0, N_pad - N))).astype(jnp.float32)


def fold_acdc_params(A, D, bias, consts: ACDCConstants, *, weight_dtype=jnp.bfloat16):
    """Precompute (W, bias_p) once when A/D/bias are frozen (inference): then call
    acdc_apply_weight(x, W, bias_p) with zero per-call prologue."""
    K_eff = consts.Fr.shape[0]
    return _fold_weight(A[:, :K_eff], D, consts, weight_dtype), _fold_bias(bias, consts)


# ---------------------------------------------------------------------------
# Fused single-matmul path:  out = x @ W + bias_p
# ---------------------------------------------------------------------------

def _acdc_fused_kernel(x_ref, w_ref, b_ref, o_ref):
    # A, rfft, D, ifft, perm and 1/norm all live in W. bf16 (or f32) MXU operands,
    # f32 accumulation, one VPU bias add, lane-dense store.
    x_tile = x_ref[...].astype(w_ref.dtype)
    acc = jnp.dot(x_tile, w_ref[...], preferred_element_type=jnp.float32)
    o_ref[...] = (acc + b_ref[...]).astype(o_ref.dtype)


def _pick_batch_tile(B: int, block_b: int) -> int:
    """Multiple of 8, as large as block_b, but keep >=2 batch grid steps when B allows
    so both v7x TensorCores get work (no-op on v5e/v6e)."""
    if B <= 8:
        return B
    tb = min(block_b, _round_up(B, 8))
    if tb >= B:
        tb = min(_round_up((B + 1) // 2, 8), B)
    return tb


def _pick_col_tile(N_pad, K_eff, TB, w_isize, x_isize, o_isize, budget) -> int:
    """Largest column tile (multiple of 128, divides N_pad) whose 2-buffered working set
    fits the VMEM budget. Full N_pad (resident W) whenever it fits."""
    def need(tn):
        return 2 * (TB * K_eff * x_isize + K_eff * tn * w_isize
                    + tn * 4 + TB * tn * o_isize)
    if need(N_pad) <= budget:
        return N_pad
    best = 128
    tn = 128
    while tn <= N_pad:
        if N_pad % tn == 0 and need(tn) <= budget:
            best = tn
        tn += 128
    return best


def acdc_apply_weight(x_eff, W, bias_p, *, block_b: int = 512, out_dtype=None,
                      vmem_budget_bytes: int = 40 * 1024 * 1024):
    """out_pad = x_eff @ W + bias_p, tiled over (columns, batch)."""
    B, K_eff = x_eff.shape
    K_w, N_pad = W.shape
    assert K_w == K_eff
    out_dtype = x_eff.dtype if out_dtype is None else np.dtype(out_dtype)

    x_isize = x_eff.dtype.itemsize
    w_isize = np.dtype(W.dtype).itemsize
    o_isize = np.dtype(out_dtype).itemsize

    TB = _pick_batch_tile(B, block_b)
    TN = _pick_col_tile(N_pad, K_eff, TB, w_isize, x_isize, o_isize, vmem_budget_bytes)

    nb = pl.cdiv(B, TB)
    nc = pl.cdiv(N_pad, TN)
    # Columns outer, batch inner: W/bias block index is constant over the inner loop,
    # so the pipeline keeps them resident; x/out tiles stream over the batch.
    grid = (nc, nb)

    # 2 buffers for every BlockSpec operand (W/bias included) + headroom.
    vmem_need = 2 * (TB * K_eff * x_isize + K_eff * TN * w_isize
                     + TN * 4 + TB * TN * o_isize)
    vmem_limit = int(min(max(vmem_need + (1 << 20), 32 << 20), 96 << 20))

    cost = pl.CostEstimate(
        flops=2 * B * K_eff * N_pad,
        transcendentals=0,
        bytes_accessed=(nc * B * K_eff * x_isize          # x re-read per column block
                        + K_eff * N_pad * w_isize
                        + N_pad * 4
                        + B * N_pad * o_isize),
    )

    return pl.pallas_call(
        _acdc_fused_kernel,
        grid=grid,
        in_specs=[
            pl.BlockSpec((TB, K_eff), lambda c, b: (b, 0)),    # x: streams over batch
            pl.BlockSpec((K_eff, TN), lambda c, b: (0, c)),    # W: resident per column block
            pl.BlockSpec((1, TN), lambda c, b: (0, c)),        # bias: resident per column block
        ],
        out_specs=pl.BlockSpec((TB, TN), lambda c, b: (b, c)),
        out_shape=jax.ShapeDtypeStruct((B, N_pad), out_dtype),
        compiler_params=pltpu.CompilerParams(
            dimension_semantics=("parallel", "parallel"),   # megacore sharding on v7x
            vmem_limit_bytes=vmem_limit,
        ),
        cost_estimate=cost,
    )(x_eff, W, bias_p)


# ---------------------------------------------------------------------------
# Small-batch two-stage path (B < in_f): skip the O(K*N^2) W-building prologue and do
# out = ((x*A) ⊙-scaled rDFT) @ iDFT directly — cost ~2*B*(H+1)*(K+N) flops instead.
# ---------------------------------------------------------------------------

def _acdc_twostage_kernel(x_ref, frd_ref, fid_ref, gc_ref, gs_ref, b_ref, o_ref):
    z = x_ref[...]
    zr = jnp.dot(z, frd_ref[...], preferred_element_type=jnp.float32)
    zi = jnp.dot(z, fid_ref[...], preferred_element_type=jnp.float32)
    acc = (jnp.dot(zr, gc_ref[...], preferred_element_type=jnp.float32)
           - jnp.dot(zi, gs_ref[...], preferred_element_type=jnp.float32))
    o_ref[...] = (acc + b_ref[...]).astype(o_ref.dtype)


def _acdc_twostage(x_eff, A_eff, D, bias_p, consts: ACDCConstants, *, out_dtype):
    B, K_eff = x_eff.shape
    H1 = consts.Fr.shape[1]
    N_pad = consts.Gc_p.shape[1]

    # Fold A and D into the forward rDFT bases (tiny (K_eff, H1) elementwise ops).
    a_col = A_eff.reshape(-1)[:, None]
    FrD = (a_col * consts.Fr) * D
    FiD = (a_col * consts.Fi) * D

    def full(shape):
        return pl.BlockSpec(shape, lambda i: (0,) * len(shape))

    elems = (B * K_eff + 2 * K_eff * H1 + 2 * H1 * N_pad + N_pad + B * N_pad)
    vmem_limit = int(min(max(2 * 4 * elems + (1 << 20), 32 << 20), 96 << 20))
    cost = pl.CostEstimate(
        flops=4 * B * H1 * (K_eff + N_pad),
        transcendentals=0,
        bytes_accessed=4 * elems,
    )

    return pl.pallas_call(
        _acdc_twostage_kernel,
        grid=(1,),
        in_specs=[
            full((B, K_eff)),
            full((K_eff, H1)),
            full((K_eff, H1)),
            full((H1, N_pad)),
            full((H1, N_pad)),
            full((1, N_pad)),
        ],
        out_specs=full((B, N_pad)),
        out_shape=jax.ShapeDtypeStruct((B, N_pad), out_dtype),
        compiler_params=pltpu.CompilerParams(
            dimension_semantics=("arbitrary",),
            vmem_limit_bytes=vmem_limit,
        ),
        cost_estimate=cost,
    )(x_eff, FrD, FiD, consts.Gc_p, consts.Gs_p, bias_p)


# ---------------------------------------------------------------------------
# Full layer forward.
# ---------------------------------------------------------------------------

@functools.partial(
    jax.jit,
    static_argnames=("block_b", "weight_dtype", "out_dtype", "return_padded",
                     "vmem_budget_bytes"))
def acdc_forward(x, A, D, bias, consts: ACDCConstants, *,
                 block_b: int = 512,
                 weight_dtype=jnp.bfloat16,
                 out_dtype=None,
                 return_padded: bool = False,
                 vmem_budget_bytes: int = 40 * 1024 * 1024):
    B, in_f = x.shape
    N = consts.perm.shape[0]
    K_eff = consts.Fr.shape[0]
    H1 = consts.Fr.shape[1]
    N_pad = consts.Gc_p.shape[1]
    out_dtype = x.dtype if out_dtype is None else np.dtype(out_dtype)

    # rfft(n=N) ignores input samples beyond N -> drop the all-zero W rows / x columns.
    x_eff = x[:, :K_eff] if in_f > K_eff else x
    A_eff = A[:, :K_eff] if in_f > K_eff else A

    bias_p = _fold_bias(bias, consts)

    # Small-batch: building W would dominate (~2*K*N^2 flops + HBM round trip);
    # use the two-stage kernel when its single-block working set fits the budget.
    twostage_bytes = 2 * 4 * (B * K_eff + 2 * K_eff * H1 + 2 * H1 * N_pad
                              + N_pad + B * N_pad)
    if B < K_eff and twostage_bytes <= vmem_budget_bytes:
        out_pad = _acdc_twostage(x_eff, A_eff, D, bias_p, consts, out_dtype=out_dtype)
    else:
        W = _fold_weight(A_eff, D, consts, weight_dtype)
        out_pad = acdc_apply_weight(x_eff, W, bias_p, block_b=block_b,
                                    out_dtype=out_dtype,
                                    vmem_budget_bytes=vmem_budget_bytes)

    if return_padded or N_pad == N:
        return out_pad
    # Padded lanes of W / bias are exactly zero, so the slice only drops zeros.
    return out_pad[:, :N]


def acdc_reference(x, A, D, bias, perm, in_f, out_f):
    # Pure-JAX reference mirroring the PyTorch forward.
    norm = np.float32(np.sqrt(max(in_f, out_f)))
    z = x * A
    Z = jnp.fft.rfft(z, n=out_f, axis=-1)
    Z = Z * D
    v = jnp.fft.ifft(Z, n=out_f, axis=-1)
    y = jnp.real(v).astype(jnp.float32) + bias
    return y[:, perm] / norm


if __name__ == "__main__":
    in_f, out_f, B = 16, 32, 256

    key = jax.random.PRNGKey(0)
    k1, k2, k3, k4, k5 = jax.random.split(key, 5)
    A = jax.random.uniform(k1, (1, in_f), dtype=jnp.float32)            # torch.rand(1, in_f)
    D = jax.random.uniform(k2, (1, out_f // 2 + 1), dtype=jnp.float32)  # torch.rand(1, out_f//2+1)
    bias = jax.random.uniform(k3, (1, out_f), dtype=jnp.float32)        # torch.rand(1, out_f)
    perm = jax.random.permutation(k4, out_f)                            # torch.randperm(out_f)
    x = jax.random.normal(k5, (B, in_f), dtype=jnp.float32)

    consts = make_acdc_constants(in_f, out_f, np.asarray(perm))         # built once at init

    # Large-batch path: fused single-matmul kernel (2 parallel batch grid steps).
    out = jax.block_until_ready(acdc_forward(x, A, D, bias, consts))
    ref = acdc_reference(x, A, D, bias, perm, in_f, out_f)
    assert out.shape == (B, out_f)
    # bf16 weight quantization (f32 accumulation) -> slightly looser tolerance than pure f32.
    assert bool(jnp.allclose(out, ref, atol=1e-2, rtol=1e-2)), \
        f"fused path max abs err {float(jnp.max(jnp.abs(out - ref)))}"

    # Small-batch path (B < in_f): two-stage kernel, no W-building prologue.
    x_small = x[:4]
    out_s = jax.block_until_ready(acdc_forward(x_small, A, D, bias, consts))
    ref_s = acdc_reference(x_small, A, D, bias, perm, in_f, out_f)
    assert out_s.shape == (4, out_f)
    assert bool(jnp.allclose(out_s, ref_s, atol=1e-2, rtol=1e-2)), \
        f"two-stage path max abs err {float(jnp.max(jnp.abs(out_s - ref_s)))}"

    print("KERNEL_OK")
</pallas_src>

<mosaic_0001>
module attributes {stable_mosaic.version = 11 : i64} {
  func.func @_acdc_fused_kernel(%arg0: i32, %arg1: i32, %arg2: memref<128x16xf32, #tpu.memory_space<vmem>>, %arg3: memref<16x128xbf16, #tpu.memory_space<vmem>>, %arg4: memref<1x128xf32, #tpu.memory_space<vmem>>, %arg5: memref<128x128xf32, #tpu.memory_space<vmem>>) attributes {dimension_semantics = [#tpu.dimension_semantics<parallel>, #tpu.dimension_semantics<parallel>], iteration_bounds = array<i64: 1, 2>, scalar_prefetch = 0 : i64, scratch_operands = 0 : i64, tpu.core_type = #tpu.core_type<tc>, window_params = [{transform_indices = @transform_0, window_bounds = array<i64: 128, 16>}, {transform_indices = @transform_1, window_bounds = array<i64: 16, 128>}, {transform_indices = @transform_2, window_bounds = array<i64: 1, 128>}, {transform_indices = @transform_3, window_bounds = array<i64: 128, 128>}]} {
    %c0 = arith.constant 0 : index
    %c0_0 = arith.constant 0 : index
    %0 = vector.load %arg2[%c0, %c0_0] : memref<128x16xf32, #tpu.memory_space<vmem>>, vector<128x16xf32>
    %1 = arith.truncf %0 : vector<128x16xf32> to vector<128x16xbf16>
    %c0_1 = arith.constant 0 : index
    %c0_2 = arith.constant 0 : index
    %2 = vector.load %arg3[%c0_1, %c0_2] : memref<16x128xbf16, #tpu.memory_space<vmem>>, vector<16x128xbf16>
    %cst = arith.constant dense<0.000000e+00> : vector<128x128xf32>
    %3 = tpu.matmul %1, %2, %cst {dimension_numbers = #tpu.dot_dimension_numbers<[1], [0], [0], [1], [0, 0, 1, 1], [], []>} : vector<128x16xbf16>, vector<16x128xbf16>, vector<128x128xf32> -> vector<128x128xf32>
    %c0_3 = arith.constant 0 : index
    %c0_4 = arith.constant 0 : index
    %4 = vector.load %arg4[%c0_3, %c0_4] : memref<1x128xf32, #tpu.memory_space<vmem>>, vector<1x128xf32>
    %5 = vector.broadcast %4 : vector<1x128xf32> to vector<128x128xf32>
    %6 = arith.addf %3, %5 : vector<128x128xf32>
    %c0_5 = arith.constant 0 : index
    %c0_6 = arith.constant 0 : index
    %7 = vector.load %arg5[%c0_5, %c0_6] : memref<128x128xf32, #tpu.memory_space<vmem>>, vector<128x128xf32>
    tpu.vector_store %arg5[%c0_5, %c0_6], %6 {strides = array<i32>} : memref<128x128xf32, #tpu.memory_space<vmem>>, vector<128x128xf32>,
    return
  }
  func.func @transform_0(%arg0: i32, %arg1: i32) -> (i32, i32) {
    %c0_i32 = arith.constant 0 : i32
    %c0_i32_0 = arith.constant 0 : i32
    return %arg1, %c0_i32 : i32, i32
  }
  func.func @transform_1(%arg0: i32, %arg1: i32) -> (i32, i32) {
    %c0_i32 = arith.constant 0 : i32
    %c0_i32_0 = arith.constant 0 : i32
    return %c0_i32, %arg0 : i32, i32
  }
  func.func @transform_2(%arg0: i32, %arg1: i32) -> (i32, i32) {
    %c0_i32 = arith.constant 0 : i32
    %c0_i32_0 = arith.constant 0 : i32
    return %c0_i32, %arg0 : i32, i32
  }
  func.func @transform_3(%arg0: i32, %arg1: i32) -> (i32, i32) {
    %c0_i32 = arith.constant 0 : i32
    return %arg1, %arg0 : i32, i32
  }
}

</mosaic_0001>

<bundles_post_ra>
// kernel: acdc_forward.1
= control target key start
LH: loop header
LB: loop body
LE: loop exit
PB: predicated region body
PF: predicated region fallthrough
CT: control target
= control target key end

     0   :  { %s626_s12 = smov 0   ;;  %s628_s13 = smov 0   ;;  %s698_s0 = inlined_call_operand.vmem [shape: f32[256,16], index: 0, kind: input, shape index: {}]   ;;  %s699_s1 = inlined_call_operand.vmem [shape: bf16[16,128], index: 1, kind: input, shape index: {}]   ;;  %s700_s2 = inlined_call_operand.vmem [shape: f32[1,128], index: 2, kind: input, shape index: {}]   ;;  %s701_s3 = inlined_call_operand.vmem [shape: f32[256,128], index: 3, kind: output, shape index: {}]  }
   0x1   :  { %s630_s14 = smov 0  }
   0x2 LB: > { %s22_s15 = sadd.s32 1, %s600_s13  ;;  %p511_p0 = scmp.ge.s32.totalorder %s604_s14, 1  ;;  %s604_s14 = sphi %s630_s14, %s13_s14   ;;  %s600_s13 = sphi %s628_s13, %s703_s13   ;;  %s596_s12 = sphi %s626_s12, %s702_s12  }
   0x3   : > { %p23_p1 = scmp.ge.s32.totalorder %s22_s15, 2  ;;  %p169_p2 = scmp.lt.s32.totalorder %s604_s14, 3 }
   0x5   : > { %s705_s15 = smov (%p23_p1, %s22_s15), 0  ;;  %p170_p3 = pnand %p511_p0, %p169_p2 }
   0x6   : > { %v581_v0 = vld [vmem:[%s699_s1] sm:$0xff] (!%p170_p3)   ;;  %s512_s18 = sshll.u32 (!%p170_p3), %s596_s12, 4  ;;  %vm265_vm0 = vcmask (!%p170_p3), 130048  }
   0x7   : > { %173 = sbr.rel (%p170_p3) target bundleno = 248 (0xf8), region = 32  ;;  %p204_p4 = scmp.lt.s32.totalorder (!%p170_p3), %s512_s18, 31  ;;  %537 = vmatprep.subr.bf16.mxu0 (!%p170_p3), %v581_v0  ;;  %555 = vmatprep.subr.bf16.mxu1 (!%p170_p3), %v581_v0  ;;  %v516_v25 = vld [vmem:[%s700_s2] ss:$0 sm:$0xff] (!%p170_p3) }
   0x8   : > { %538 = vmatpush3.bf16.msra.mxu0 (!%p170_p3), %v581_v0  ;;  %556 = vmatpush3.bf16.msra.mxu1 (!%p170_p3), %v581_v0 }
   0xe   : > { %s707_s18 = smov (!%p204_p4, %s512_s18), 31 }
   0xf   : > { %s513_s19 = sshll.u32 %s707_s18, 3 }
  0x10   : > { %s207_s22 = scalar_lea.vmem %s698_s0, %s513_s19  ;;  %s671_s27 = scalar_lea.vmem %s701_s3, %s513_s19 }
  0x11   : > { %v226_v1 = vld [vmem:[%s207_s22] sm:$0xff]  ;;  %v227_v2 = vld [vmem:[%s207_s22 + $0x8] sm:$0xff]  ;;  %v228_v6 = vld [vmem:[%s207_s22 + $0x10] sm:$0xff] }
  0x12   : > { %v234_v3 = vld [vmem:[%s207_s22 + $0x40] sm:$0xff]  ;;  %v242_v4 = vpack.c.bf16 %v227_v2, %v226_v1  ;;  %v235_v5 = vld [vmem:[%s207_s22 + $0x48] sm:$0xff]  ;;  %v229_v7 = vld [vmem:[%s207_s22 + $0x18] sm:$0xff] }
  0x13   : > { %v246_v8 = vpack.c.bf16 %v235_v5, %v234_v3  ;;  %v243_v9 = vpack.c.bf16 %v229_v7, %v228_v6  ;;  %v236_v10 = vld [vmem:[%s207_s22 + $0x50] sm:$0xff]  ;;  %v237_v11 = vld [vmem:[%s207_s22 + $0x58] sm:$0xff]  ;;  %v230_v12 = vld [vmem:[%s207_s22 + $0x20] sm:$0xff] }
  0x14   : > { %539 = vmatprep.mubr.msk.bf16.mxu0 %vm265_vm0, %v242_v4  ;;  %v247_v13 = vpack.c.bf16 %v237_v11, %v236_v10  ;;  %v231_v14 = vld [vmem:[%s207_s22 + $0x28] sm:$0xff]  ;;  %v238_v15 = vld [vmem:[%s207_s22 + $0x60] sm:$0xff]  ;;  %v232_v19 = vld [vmem:[%s207_s22 + $0x30] sm:$0xff] }
  0x15   : > { %v239_v16 = vld [vmem:[%s207_s22 + $0x68] sm:$0xff]  ;;  %547 = vmatprep.mubr.msk.bf16.mxu1 %vm265_vm0, %v246_v8  ;;  %540 = vmatmul.mubr.msk.bf16.vlgmr.msra.gmra.mrb[0].mxu0 %vm265_vm0, %v243_v9  ;;  %v244_v17 = vpack.c.bf16 %v231_v14, %v230_v12  ;;  %v233_v20 = vld [vmem:[%s207_s22 + $0x38] sm:$0xff]  ;;  %v240_v21 = vld [vmem:[%s207_s22 + $0x70] sm:$0xff] }
  0x16   : > { %v248_v18 = vpack.c.bf16 %v239_v16, %v238_v15  ;;  %548 = vmatmul.mubr.msk.bf16.vlgmr.msra.gmra.mrb[0].mxu1 %vm265_vm0, %v247_v13  ;;  %v241_v22 = vld [vmem:[%s207_s22 + $0x78] sm:$0xff]  ;;  %v245_v23 = vpack.c.bf16 %v233_v20, %v232_v19 }
  0x17   : > { %543 = vmatprep.mubr.msk.bf16.mxu0 %vm265_vm0, %v244_v17  ;;  %v249_v24 = vpack.c.bf16 %v241_v22, %v240_v21 }
  0x18   : > { %551 = vmatprep.mubr.msk.bf16.mxu1 %vm265_vm0, %v248_v18 }
  0x1d   : > { %544 = vmatmul.mubr.msk.bf16.gmra.mrb[4].mxu0 %vm265_vm0, %v245_v23 }
  0x1e   : > { %552 = vmatmul.mubr.msk.bf16.gmra.mrb[4].mxu1 %vm265_vm0, %v249_v24 }
  0xe8   : > { %v541_v26 = vpop.f32.mrb[0].mxu0 }
  0xe9   : > { %v333_v27 = vadd.f32 %v541_v26, %v516_v25  ;;  %v549_v28 = vpop.f32.mrb[0].mxu1  ;;  %v324_v29 = vpop.f32.mrb[1].mxu0 }
  0xea   : > { %v365_v30 = vadd.f32 %v549_v28, %v516_v25  ;;  %v325_v31 = vadd.f32 %v516_v25, %v324_v29  ;;  %v356_v32 = vpop.f32.mrb[1].mxu1  ;;  %v542_v33 = vpop.f32.mrb[2].mxu0 }
  0xeb   : > { %389 = vst [vmem:[%s671_s27 + $0x10] sm:$0xff] %v333_v27  ;;  %v357_v34 = vadd.f32 %v516_v25, %v356_v32  ;;  %v336_v35 = vadd.f32 %v542_v33, %v516_v25  ;;  %v550_v36 = vpop.f32.mrb[2].mxu1  ;;  %v327_v37 = vpop.f32.mrb[3].mxu0 }
  0xec   : > { %397 = vst [vmem:[%s671_s27 + $0x50] sm:$0xff] %v365_v30  ;;  %387 = vst [vmem:[%s671_s27] sm:$0xff] %v325_v31  ;;  %v368_v38 = vadd.f32 %v550_v36, %v516_v25  ;;  %v328_v39 = vadd.f32 %v516_v25, %v327_v37  ;;  %v359_v40 = vpop.f32.mrb[3].mxu1 }
  0xed   : > { %395 = vst [vmem:[%s671_s27 + $0x40] sm:$0xff] %v357_v34  ;;  %390 = vst [vmem:[%s671_s27 + $0x18] sm:$0xff] %v336_v35  ;;  %v360_v41 = vadd.f32 %v516_v25, %v359_v40 }
  0xee   : > { %398 = vst [vmem:[%s671_s27 + $0x58] sm:$0xff] %v368_v38  ;;  %388 = vst [vmem:[%s671_s27 + $0x8] sm:$0xff] %v328_v39 }
  0xef   : > { %396 = vst [vmem:[%s671_s27 + $0x48] sm:$0xff] %v360_v41 }
  0xf0   : > { %v545_v42 = vpop.f32.mrb[4].mxu0 }
  0xf1   : > { %v349_v43 = vadd.f32 %v545_v42, %v516_v25  ;;  %v553_v44 = vpop.f32.mrb[4].mxu1  ;;  %v340_v45 = vpop.f32.mrb[5].mxu0 }
  0xf2   : > { %v381_v46 = vadd.f32 %v553_v44, %v516_v25  ;;  %v341_v47 = vadd.f32 %v516_v25, %v340_v45  ;;  %v372_v48 = vpop.f32.mrb[5].mxu1  ;;  %v546_v49 = vpop.f32.mrb[6].mxu0 }
  0xf3   : > { %393 = vst [vmem:[%s671_s27 + $0x30] sm:$0xff] %v349_v43  ;;  %v373_v50 = vadd.f32 %v516_v25, %v372_v48  ;;  %v352_v51 = vadd.f32 %v546_v49, %v516_v25  ;;  %v554_v52 = vpop.f32.mrb[6].mxu1  ;;  %v343_v53 = vpop.f32.mrb[7].mxu0 }
  0xf4   : > { %401 = vst [vmem:[%s671_s27 + $0x70] sm:$0xff] %v381_v46  ;;  %391 = vst [vmem:[%s671_s27 + $0x20] sm:$0xff] %v341_v47  ;;  %v384_v54 = vadd.f32 %v554_v52, %v516_v25  ;;  %v344_v55 = vadd.f32 %v516_v25, %v343_v53  ;;  %v375_v56 = vpop.f32.mrb[7].mxu1 }
  0xf5   : > { %399 = vst [vmem:[%s671_s27 + $0x60] sm:$0xff] %v373_v50  ;;  %394 = vst [vmem:[%s671_s27 + $0x38] sm:$0xff] %v352_v51  ;;  %v376_v57 = vadd.f32 %v516_v25, %v375_v56 }
  0xf6   : > { %402 = vst [vmem:[%s671_s27 + $0x78] sm:$0xff] %v384_v54  ;;  %392 = vst [vmem:[%s671_s27 + $0x28] sm:$0xff] %v344_v55 }
  0xf7   : > { %400 = vst [vmem:[%s671_s27 + $0x68] sm:$0xff] %v376_v57 }
  0xf8 PF: > { %s13_s14 = sadd.s32 1, %s604_s14   ;;  %s702_s12 = smov %s600_s13 }
  0xf9   : > { %p10_p5 = scmp.ge.s32.totalorder %s13_s14, 4   ;;  %s703_s13 = smov %s705_s15 }
  0xfb   :  { %12 = sbr.rel (!%p10_p5) target bundleno = 2 (0x2), region = 68 }

</bundles_post_ra>
